<compile_context>
chip_gen: v7x
topology: tpu7x:2x2x1
jax: 0.10.0
libtpu: 0.0.40
codegen_flags: <defaults>
</compile_context>

<pallas_src>
import jax
import jax.numpy as jnp
from jax import lax
from jax.experimental import pallas as pl
from jax.experimental.pallas import tpu as pltpu

_LANE = 128
_SUB = 8
_NEG_SENTINEL = -1e30   # finite "minus infinity" for masked logits (exp -> 0)

_VMEM_LIMIT_CACHE = None


def _vmem_limit_bytes():
    """Generation-aware scoped-VMEM limit (48 MiB on v7x-sized parts, 64 MiB else)."""
    global _VMEM_LIMIT_CACHE
    if _VMEM_LIMIT_CACHE is None:
        try:
            cap = int(pltpu.get_tpu_info().vmem_capacity_bytes)
        except Exception:
            cap = 64 * 1024 * 1024          # conservative (v7x-sized) fallback
        if cap <= 64 * 1024 * 1024:
            _VMEM_LIMIT_CACHE = 48 * 1024 * 1024
        else:
            _VMEM_LIMIT_CACHE = 64 * 1024 * 1024
    return _VMEM_LIMIT_CACHE


# ---------------------------------------------------------------------------
# Fused multi-stage MSE: sum((x_s - y)^2) for several same-shape x_s, one call.
# ---------------------------------------------------------------------------
def _make_mse_kernel(n_stages, rows, tile_rows, chunk, spp, nblocks, has_phantom):
    n_chunks = tile_rows // chunk
    use_fold = (chunk % _SUB == 0)
    fold = chunk // _SUB if use_fold else 1
    has_remainder = (rows % tile_rows != 0)

    def kernel(*refs):
        y_ref = refs[0]
        x_refs = refs[1:1 + n_stages]
        out_ref = refs[1 + n_stages]
        acc_ref = refs[2 + n_stages]

        i = pl.program_id(0)          # shard (parallel, feeds v7x megacore)
        k = pl.program_id(1)          # step within shard (reduction)
        blk = i * spp + k

        @pl.when(k == 0)
        def _():
            acc_ref[...] = jnp.zeros_like(acc_ref)

        def chunk_body(c, masked):
            r0 = c * chunk
            if not isinstance(r0, int):
                r0 = pl.multiple_of(r0, chunk)
            y = y_ref[pl.ds(r0, chunk), :].astype(jnp.float32)
            if masked:
                ridx = (blk * tile_rows + c * chunk
                        + lax.broadcasted_iota(jnp.int32, (chunk, _LANE), 0))
                valid = ridx < rows
            for s in range(n_stages):
                d = x_refs[s][pl.ds(r0, chunk), :].astype(jnp.float32) - y
                sq = d * d
                if masked:
                    sq = jnp.where(valid, sq, 0.0)
                if use_fold:
                    # (chunk,128) -> (chunk/8, 8, 128): pure VPU vreg adds.
                    sq = sq.reshape(fold, _SUB, _LANE).sum(axis=0)
                acc_ref[s] += sq

        def accumulate(masked):
            if n_chunks == 1:
                chunk_body(0, masked)
            else:
                def body_fn(c, carry):
                    chunk_body(c, masked)
                    return carry
                lax.fori_loop(0, n_chunks, body_fn, 0)

        if has_remainder:
            # Only the last real block pays the mask cost; phantoms skipped.
            @pl.when(blk < nblocks - 1)
            def _():
                accumulate(False)

            @pl.when(blk == nblocks - 1)
            def _():
                accumulate(True)
        elif has_phantom:
            @pl.when(blk < nblocks)
            def _():
                accumulate(False)
        else:
            accumulate(False)

        @pl.when(k == pl.num_programs(1) - 1)
        def _():
            out_ref[...] = acc_ref[...]

    return kernel


def _sum_sq_diff(xs, y, *, n_shards=2, max_tile_rows=8192, chunk_rows=1024,
                 input_vmem_budget=None):
    """Sum of squared differences of each x in xs vs y, one fused launch."""
    n_stages = len(xs)
    n = y.size

    def to2d(a):
        a = jnp.ravel(a)
        if n % _LANE:
            # TODO(synk): rare non-128-divisible sizes take one pad copy here.
            a = jnp.pad(a, (0, _LANE - n % _LANE))
        return a.reshape(-1, _LANE)

    y2 = to2d(y)
    xs2 = [to2d(x) for x in xs]
    rows = y2.shape[0]

    vmem_limit = _vmem_limit_bytes()
    if input_vmem_budget is None:
        input_vmem_budget = max(4 << 20, vmem_limit - (12 << 20))

    itemsize = max([y2.dtype.itemsize] + [x.dtype.itemsize for x in xs2])
    row_bytes = _LANE * itemsize
    budget_rows = max(_SUB, input_vmem_budget // ((n_stages + 1) * 2 * row_bytes))
    tile_cap = max(_SUB, (min(max_tile_rows, budget_rows) // _SUB) * _SUB)
    chunk = max(_SUB, (min(chunk_rows, tile_cap) // _SUB) * _SUB)

    if rows <= chunk:
        tile_rows = rows                  # single block == full dim (legal)
        chunk = rows
    else:
        tile_rows = max(chunk, min((tile_cap // chunk) * chunk,
                                   (rows // chunk) * chunk))
    acc_rows = _SUB if chunk % _SUB == 0 else chunk

    nblocks = pl.cdiv(rows, tile_rows)
    ns = max(1, min(n_shards, nblocks))   # 2 shards -> both v7x cores
    spp = pl.cdiv(nblocks, ns)
    has_phantom = (ns * spp > nblocks)

    if has_phantom:
        in_map = lambda i, k: (jnp.minimum(i * spp + k, nblocks - 1), 0)
    else:
        in_map = lambda i, k: (i * spp + k, 0)

    out = pl.pallas_call(
        _make_mse_kernel(n_stages, rows, tile_rows, chunk, spp, nblocks,
                         has_phantom),
        out_shape=jax.ShapeDtypeStruct((ns, n_stages, acc_rows, _LANE),
                                       jnp.float32),
        grid_spec=pltpu.PrefetchScalarGridSpec(
            num_scalar_prefetch=0,
            grid=(ns, spp),
            in_specs=[pl.BlockSpec((tile_rows, _LANE), in_map)] * (n_stages + 1),
            out_specs=pl.BlockSpec((None, n_stages, acc_rows, _LANE),
                                   lambda i, k: (i, 0, 0, 0)),
            scratch_shapes=[pltpu.VMEM((n_stages, acc_rows, _LANE),
                                       jnp.float32)],
        ),
        compiler_params=pltpu.CompilerParams(
            dimension_semantics=("parallel", "arbitrary"),
            vmem_limit_bytes=vmem_limit),
        cost_estimate=pl.CostEstimate(
            flops=int(3 * n * n_stages),
            transcendentals=0,
            bytes_accessed=int(y2.nbytes + sum(x.nbytes for x in xs2)
                               + ns * n_stages * acc_rows * _LANE * 4)),
    )(y2, *xs2)
    return jnp.sum(out, axis=(0, 2, 3))       # (n_stages,) sum of squared diff


def mse_loss(x, y, **kw):
    """Equivalent of torch.nn.MSELoss() (mean reduction)."""
    return _sum_sq_diff([x], y, **kw)[0] / jnp.float32(y.size)


def multi_mse_loss(xs, y, **kw):
    """MSE of several same-shape tensors vs one shared target, one launch."""
    s = _sum_sq_diff(list(xs), y, **kw)
    inv_n = 1.0 / jnp.float32(y.size)
    return [s[i] * inv_n for i in range(len(xs))]


# ---------------------------------------------------------------------------
# MaximumLikelihoodLoss:
#   per channel c: lse_c = logsumexp(pred_c); loss_c = lse_c - sum(t*p)/sum(t)
#   loss = sum_c loss_c
# Batch folded into rows; lane-wide running stats; exact merge in the wrapper.
# ---------------------------------------------------------------------------
def _make_mll_kernel(Lp, tr, tile_l, acc_w, n_lb):
    n_grp = tile_l // acc_w
    need_mask = (n_lb * tile_l != Lp)

    def kernel(p_ref, t_ref, out_ref, m_sc, l_sc, tp_sc, ts_sc):
        l = pl.program_id(1)          # L tile (reduction, last grid axis)

        @pl.when(l == 0)
        def _():
            m_sc[...] = jnp.full_like(m_sc, -jnp.inf)
            l_sc[...] = jnp.zeros_like(l_sc)
            tp_sc[...] = jnp.zeros_like(tp_sc)
            ts_sc[...] = jnp.zeros_like(ts_sc)

        def update(masked):
            p = p_ref[...].astype(jnp.float32)      # (tr, tile_l)
            t = t_ref[...].astype(jnp.float32)
            if masked:
                col = l * tile_l + lax.broadcasted_iota(jnp.int32, p.shape, 1)
                valid = col < Lp
                p = jnp.where(valid, p, _NEG_SENTINEL)
                t = jnp.where(valid, t, 0.0)
            # Lane-group folds: 128-aligned static slices -> pure VPU max/add,
            # no per-step cross-lane (XLU) reductions.
            pg = [p[:, g * acc_w:(g + 1) * acc_w] for g in range(n_grp)]
            tg = [t[:, g * acc_w:(g + 1) * acc_w] for g in range(n_grp)]
            m_tile = pg[0]
            for g in range(1, n_grp):
                m_tile = jnp.maximum(m_tile, pg[g])
            m_new = jnp.maximum(m_sc[...], m_tile)
            e_sum = jnp.exp(pg[0] - m_new)
            tp = tg[0] * pg[0]
            ts = tg[0]
            for g in range(1, n_grp):
                e_sum = e_sum + jnp.exp(pg[g] - m_new)
                tp = tp + tg[g] * pg[g]
                ts = ts + tg[g]
            l_sc[...] = jnp.exp(m_sc[...] - m_new) * l_sc[...] + e_sum
            tp_sc[...] += tp
            ts_sc[...] += ts
            m_sc[...] = m_new

        if need_mask:
            # Only the last L block pays the mask cost.
            @pl.when(l < n_lb - 1)
            def _():
                update(False)

            @pl.when(l == n_lb - 1)
            def _():
                update(True)
        else:
            update(False)

        @pl.when(l == n_lb - 1)
        def _():
            out_ref[0] = m_sc[...]
            out_ref[1] = l_sc[...]
            out_ref[2] = tp_sc[...]
            out_ref[3] = ts_sc[...]

    return kernel


def maximum_likelihood_loss(pred, target, *, max_tile_l=32768):
    B, C, H, W = pred.shape
    HW = H * W

    # Fold batch into the row axis; additionally pack k spatial chunks per
    # (b, c) row when B*C is small so the sublane dim is well filled and there
    # are >= 2 row blocks for the megacore "parallel" axis.
    k = 1
    for cand in range(1, _SUB + 1):
        if HW % cand == 0:
            k = cand
            if B * C * cand >= 2 * _SUB:
                break
    Rows, Lp = B * C * k, HW // k

    p2 = pred.reshape(Rows, Lp)        # no transpose / astype / pad
    t2 = target.reshape(Rows, Lp)

    vmem_limit = _vmem_limit_bytes()
    input_budget = max(2 << 20, vmem_limit - (12 << 20))
    itemsize = max(p2.dtype.itemsize, t2.dtype.itemsize)

    # Row blocking: two blocks of multiple-of-8 rows when possible (one per
    # v7x TensorCore); otherwise a single full-row block.
    if Rows % _SUB == 0 and Rows >= 2 * _SUB:
        tr = ((Rows // 2 + _SUB - 1) // _SUB) * _SUB
        max_tr = max(_SUB,
                     (input_budget // (2 * 2 * _LANE * itemsize) // _SUB) * _SUB)
        tr = min(tr, max_tr)
    else:
        tr = Rows
    n_rb = pl.cdiv(Rows, tr)

    # L tiling: lane-group width acc_w; tile_l sized from the VMEM budget.
    if Lp >= _LANE:
        acc_w = _LANE
        cap_l = input_budget // (2 * 2 * tr * itemsize)
        tile_l = min(Lp, max_tile_l, max(_LANE, cap_l))
        tile_l = max(_LANE, (tile_l // _LANE) * _LANE)
    else:
        acc_w = Lp                    # tiny map: single full-dim block
        tile_l = Lp
    n_lb = pl.cdiv(Lp, tile_l)

    out = pl.pallas_call(
        _make_mll_kernel(Lp, tr, tile_l, acc_w, n_lb),
        out_shape=jax.ShapeDtypeStruct((n_rb, 4, tr, acc_w), jnp.float32),
        grid_spec=pltpu.PrefetchScalarGridSpec(
            num_scalar_prefetch=0,
            grid=(n_rb, n_lb),
            in_specs=[pl.BlockSpec((tr, tile_l), lambda r, l: (r, l))] * 2,
            out_specs=pl.BlockSpec((None, 4, tr, acc_w),
                                   lambda r, l: (r, 0, 0, 0)),
            scratch_shapes=[pltpu.VMEM((tr, acc_w), jnp.float32)] * 4,
        ),
        compiler_params=pltpu.CompilerParams(
            dimension_semantics=("parallel", "arbitrary"),
            vmem_limit_bytes=vmem_limit),
        cost_estimate=pl.CostEstimate(
            flops=int(6 * Rows * Lp),
            transcendentals=int(Rows * Lp),
            bytes_accessed=int(p2.nbytes + t2.nbytes
                               + n_rb * 4 * tr * acc_w * 4)),
    )(p2, t2)

    # Exact merge of per-(row-block, row, lane) partials into per-channel stats.
    st = jnp.transpose(out, (1, 0, 2, 3)).reshape(4, n_rb * tr, acc_w)
    st = st[:, :Rows, :].reshape(4, B, C, k, acc_w)
    m_p, l_p, tp_p, ts_p = st[0], st[1], st[2], st[3]
    m_c = jnp.max(m_p, axis=(0, 2, 3))                                  # (C,)
    l_c = jnp.sum(l_p * jnp.exp(m_p - m_c[None, :, None, None]),
                  axis=(0, 2, 3))
    lse = m_c + jnp.log(l_c)
    tp_c = jnp.sum(tp_p, axis=(0, 2, 3))
    ts_c = jnp.sum(ts_p, axis=(0, 2, 3))
    return jnp.sum(lse - tp_c / ts_c)


# ---------------------------------------------------------------------------
# OpenPoseCPMLoss.forward
# ---------------------------------------------------------------------------
def openpose_cpm_loss(outs, target, *, is_maxlikelihood=False):
    pm_target, paf_target = target
    pose_map, PAFs = outs

    if is_maxlikelihood:
        cpm_loss = 0.001 * maximum_likelihood_loss(pose_map, pm_target)
    else:
        cpm_loss = mse_loss(pose_map, pm_target)

    losses = [cpm_loss]
    if isinstance(PAFs, (list, tuple)):
        pafs = list(PAFs)
        # Group same-shape stages so the shared target is streamed once per
        # group (one fused launch per group).
        groups = {}
        for idx, p in enumerate(pafs):
            groups.setdefault(tuple(p.shape), []).append(idx)
        paf_losses = [None] * len(pafs)
        for idxs in groups.values():
            vals = multi_mse_loss([pafs[i] for i in idxs], paf_target)
            for i, v in zip(idxs, vals):
                paf_losses[i] = v
        losses.extend(paf_losses)
    else:
        losses.append(mse_loss(PAFs, paf_target))
    return sum(losses)


# ---------------------------------------------------------------------------
# Pure-JAX references for sanity checking.
# ---------------------------------------------------------------------------
def _ref_mse(x, y):
    return jnp.mean((x.astype(jnp.float32) - y.astype(jnp.float32)) ** 2)


def _ref_mll(pred, target):
    n_out = pred.shape[1]
    p = jnp.transpose(pred, (1, 0, 2, 3)).reshape(n_out, -1)
    t = jnp.transpose(target, (1, 0, 2, 3)).reshape(n_out, -1)
    logp = jax.nn.log_softmax(p, axis=1)
    ch = -(logp * t).sum(axis=1) / t.sum(axis=1)
    return ch.sum()


if __name__ == "__main__":
    key = jax.random.PRNGKey(0)
    k1, k2, k3, k4, k5 = jax.random.split(key, 5)
    B, C_PM, C_PAF, H, W = 2, 4, 16, 16, 16
    C_PAF = 8

    pose_map = jax.random.normal(k1, (B, C_PM, H, W), jnp.float32)
    pm_target = jax.nn.softplus(jax.random.normal(k2, (B, C_PM, H, W), jnp.float32))
    paf_target = jax.random.normal(k3, (B, C_PAF, H, W), jnp.float32)
    pafs = [
        jax.random.normal(k4, (B, C_PAF, H, W), jnp.float32),
        jax.random.normal(k5, (B, C_PAF, H, W), jnp.float32),
    ]

    # Default mode: MSE on pose map + fused MSE over the list of PAF stages.
    loss = openpose_cpm_loss((pose_map, pafs), (pm_target, paf_target),
                             is_maxlikelihood=False)
    loss = jax.block_until_ready(loss)
    ref = _ref_mse(pose_map, pm_target) + sum(_ref_mse(p, paf_target) for p in pafs)
    assert jnp.allclose(loss, ref, rtol=1e-5, atol=1e-5), (loss, ref)

    # Max-likelihood mode, PAFs as a single tensor.
    loss_ml = openpose_cpm_loss((pose_map, pafs[0]), (pm_target, paf_target),
                                is_maxlikelihood=True)
    loss_ml = jax.block_until_ready(loss_ml)
    ref_ml = 0.001 * _ref_mll(pose_map, pm_target) + _ref_mse(pafs[0], paf_target)
    assert jnp.allclose(loss_ml, ref_ml, rtol=1e-5, atol=1e-5), (loss_ml, ref_ml)

    # Odd spatial size: exercises non-128-multiple Lp (masked last L block).
    H2, W2 = 24, 24
    pm2 = jax.random.normal(k1, (B, C_PM, H2, W2), jnp.float32)
    pm2_t = jax.nn.softplus(jax.random.normal(k2, (B, C_PM, H2, W2), jnp.float32))
    paf2_t = jax.random.normal(k3, (B, C_PAF, H2, W2), jnp.float32)
    paf2 = jax.random.normal(k4, (B, C_PAF, H2, W2), jnp.float32)
    l2 = openpose_cpm_loss((pm2, paf2), (pm2_t, paf2_t), is_maxlikelihood=True)
    l2 = jax.block_until_ready(l2)
    r2 = 0.001 * _ref_mll(pm2, pm2_t) + _ref_mse(paf2, paf2_t)
    assert jnp.allclose(l2, r2, rtol=1e-5, atol=1e-5), (l2, r2)

    # Multi-L-block MLL (small max_tile_l) and tiny-Lp (<128) MLL.
    got_ml = jax.block_until_ready(
        maximum_likelihood_loss(pm2, pm2_t, max_tile_l=128))
    assert jnp.allclose(got_ml, _ref_mll(pm2, pm2_t), rtol=1e-5, atol=1e-5)
    pm3 = jax.random.normal(k4, (B, C_PM, 8, 8), jnp.float32)
    pm3_t = jax.nn.softplus(jax.random.normal(k5, (B, C_PM, 8, 8), jnp.float32))
    got_ml3 = jax.block_until_ready(maximum_likelihood_loss(pm3, pm3_t))
    assert jnp.allclose(got_ml3, _ref_mll(pm3, pm3_t), rtol=1e-5, atol=1e-5)

    # MSE stress paths: 2-shard / masked last block / phantom block / chunk loop.
    xa = jax.random.normal(k4, (2, 3, 32, 40), jnp.float32)   # 60 rows
    xb = jax.random.normal(k5, (2, 3, 32, 40), jnp.float32)
    ref_ab = _ref_mse(xa, xb)
    got = jax.block_until_ready(mse_loss(xa, xb, max_tile_rows=16))
    assert jnp.allclose(got, ref_ab, rtol=1e-5, atol=1e-5)            # remainder
    got = jax.block_until_ready(mse_loss(xa, xb, max_tile_rows=24))
    assert jnp.allclose(got, ref_ab, rtol=1e-5, atol=1e-5)    # remainder+phantom
    got = jax.block_until_ready(mse_loss(xa, xb, max_tile_rows=32, chunk_rows=8))
    assert jnp.allclose(got, ref_ab, rtol=1e-5, atol=1e-5)    # inner chunk loop
    xc = jax.random.normal(k1, (2, 3, 32, 32), jnp.float32)   # 48 rows
    xd = jax.random.normal(k2, (2, 3, 32, 32), jnp.float32)
    got = jax.block_until_ready(mse_loss(xc, xd, max_tile_rows=16))
    assert jnp.allclose(got, _ref_mse(xc, xd), rtol=1e-5, atol=1e-5)  # phantom only

    # Non-128-divisible element count: exercises the (rare) pad fallback.
    xe = jax.random.normal(k1, (2, 3, 10, 13), jnp.float32)
    xf = jax.random.normal(k2, (2, 3, 10, 13), jnp.float32)
    got2 = jax.block_until_ready(mse_loss(xe, xf))
    assert jnp.allclose(got2, _ref_mse(xe, xf), rtol=1e-5, atol=1e-5)

    print("KERNEL_OK")
</pallas_src>

<mosaic_0001>
module attributes {stable_mosaic.version = 11 : i64} {
  func.func @kernel(%arg0: i32, %arg1: i32, %arg2: memref<16x128xf32, #tpu.memory_space<vmem>>, %arg3: memref<16x128xf32, #tpu.memory_space<vmem>>, %arg4: memref<1x1x8x128xf32, #tpu.memory_space<vmem>>, %arg5: memref<1x8x128xf32, #tpu.memory_space<vmem>>) attributes {dimension_semantics = [#tpu.dimension_semantics<parallel>, #tpu.dimension_semantics<arbitrary>], iteration_bounds = array<i64: 1, 1>, scalar_prefetch = 0 : i64, scratch_operands = 1 : i64, tpu.core_type = #tpu.core_type<tc>, window_params = [{transform_indices = @transform_0, window_bounds = array<i64: 16, 128>}, {transform_indices = @transform_1, window_bounds = array<i64: 16, 128>}, {transform_indices = @transform_2, window_bounds = array<i64: 1, 1, 8, 128>}]} {
    %c0_i32 = arith.constant 0 : i32
    %0 = arith.cmpi eq, %arg1, %c0_i32 : i32
    %1 = arith.extui %0 : i1 to i32
    %c0_i32_0 = arith.constant 0 : i32
    %2 = arith.cmpi ne, %1, %c0_i32_0 : i32
    scf.if %2 {
      %cst_12 = arith.constant 0.000000e+00 : f32
      %18 = vector.broadcast %cst_12 : f32 to vector<1x8x128xf32>
      %c0_13 = arith.constant 0 : index
      %c0_14 = arith.constant 0 : index
      %c0_15 = arith.constant 0 : index
      %19 = vector.load %arg5[%c0_13, %c0_14, %c0_15] : memref<1x8x128xf32, #tpu.memory_space<vmem>>, vector<1x8x128xf32>
      tpu.vector_store %arg5[%c0_13, %c0_14, %c0_15], %18 {strides = array<i32>} : memref<1x8x128xf32, #tpu.memory_space<vmem>>, vector<1x8x128xf32>,
    } else {
    }
    %c0 = arith.constant 0 : index
    %c0_1 = arith.constant 0 : index
    %3 = vector.load %arg2[%c0, %c0_1] : memref<16x128xf32, #tpu.memory_space<vmem>>, vector<16x128xf32>
    %c0_2 = arith.constant 0 : index
    %c0_3 = arith.constant 0 : index
    %4 = vector.load %arg3[%c0_2, %c0_3] : memref<16x128xf32, #tpu.memory_space<vmem>>, vector<16x128xf32>
    %5 = arith.subf %4, %3 : vector<16x128xf32>
    %6 = arith.mulf %5, %5 : vector<16x128xf32>
    %7 = vector.shape_cast %6 : vector<16x128xf32> to vector<2x8x128xf32>
    %cst = arith.constant dense<0.000000e+00> : vector<8x128xf32>
    %8 = vector.multi_reduction <add>, %7, %cst [0] : vector<2x8x128xf32> to vector<8x128xf32>
    %c0_4 = arith.constant 0 : index
    %c0_5 = arith.constant 0 : index
    %c0_6 = arith.constant 0 : index
    %9 = vector.load %arg5[%c0_4, %c0_5, %c0_6] : memref<1x8x128xf32, #tpu.memory_space<vmem>>, vector<1x8x128xf32>
    %10 = vector.shape_cast %9 : vector<1x8x128xf32> to vector<8x128xf32>
    %11 = arith.addf %10, %8 : vector<8x128xf32>
    %c0_7 = arith.constant 0 : index
    %c0_8 = arith.constant 0 : index
    %c0_9 = arith.constant 0 : index
    %12 = vector.load %arg5[%c0_7, %c0_8, %c0_9] : memref<1x8x128xf32, #tpu.memory_space<vmem>>, vector<1x8x128xf32>
    %13 = vector.shape_cast %12 : vector<1x8x128xf32> to vector<8x128xf32>
    %14 = vector.shape_cast %11 : vector<8x128xf32> to vector<1x8x128xf32>
    tpu.vector_store %arg5[%c0_7, %c0_8, %c0_9], %14 {strides = array<i32>} : memref<1x8x128xf32, #tpu.memory_space<vmem>>, vector<1x8x128xf32>,
    %c0_i32_10 = arith.constant 0 : i32
    %15 = arith.cmpi eq, %arg1, %c0_i32_10 : i32
    %16 = arith.extui %15 : i1 to i32
    %c0_i32_11 = arith.constant 0 : i32
    %17 = arith.cmpi ne, %16, %c0_i32_11 : i32
    scf.if %17 {
      %c0_12 = arith.constant 0 : index
      %c0_13 = arith.constant 0 : index
      %c0_14 = arith.constant 0 : index
      %18 = vector.load %arg5[%c0_12, %c0_13, %c0_14] : memref<1x8x128xf32, #tpu.memory_space<vmem>>, vector<1x8x128xf32>
      %c0_15 = arith.constant 0 : index
      %c0_16 = arith.constant 0 : index
      %c0_17 = arith.constant 0 : index
      %c0_18 = arith.constant 0 : index
      %19 = vector.load %arg4[%c0_15, %c0_16, %c0_17, %c0_18] : memref<1x1x8x128xf32, #tpu.memory_space<vmem>>, vector<1x1x8x128xf32>
      %20 = vector.shape_cast %19 : vector<1x1x8x128xf32> to vector<1x8x128xf32>
      %21 = vector.shape_cast %18 : vector<1x8x128xf32> to vector<1x1x8x128xf32>
      tpu.vector_store %arg4[%c0_15, %c0_16, %c0_17, %c0_18], %21 {strides = array<i32>} : memref<1x1x8x128xf32, #tpu.memory_space<vmem>>, vector<1x1x8x128xf32>,
    } else {
    }
    return
  }
  func.func @transform_0(%arg0: i32, %arg1: i32) -> (i32, i32) {
    %c1_i32 = arith.constant 1 : i32
    %0 = arith.muli %arg0, %c1_i32 : i32
    %1 = arith.addi %0, %arg1 : i32
    %c0_i32 = arith.constant 0 : i32
    %c0_i32_0 = arith.constant 0 : i32
    return %1, %c0_i32 : i32, i32
  }
  func.func @transform_1(%arg0: i32, %arg1: i32) -> (i32, i32) {
    %c1_i32 = arith.constant 1 : i32
    %0 = arith.muli %arg0, %c1_i32 : i32
    %1 = arith.addi %0, %arg1 : i32
    %c0_i32 = arith.constant 0 : i32
    %c0_i32_0 = arith.constant 0 : i32
    return %1, %c0_i32 : i32, i32
  }
  func.func @transform_2(%arg0: i32, %arg1: i32) -> (i32, i32, i32, i32) {
    %c0_i32 = arith.constant 0 : i32
    %c0_i32_0 = arith.constant 0 : i32
    %c0_i32_1 = arith.constant 0 : i32
    %c0_i32_2 = arith.constant 0 : i32
    return %arg0, %c0_i32, %c0_i32_0, %c0_i32_1 : i32, i32, i32, i32
  }
}

</mosaic_0001>

<bundles_post_ra>
// kernel: tpu_custom_call.1
= control target key start
LH: loop header
LB: loop body
LE: loop exit
PB: predicated region body
PF: predicated region fallthrough
CT: control target
= control target key end

     0   :  { %7 = vsyncpa [#allocation4], 0  ;;  %s223_s0 = inlined_call_operand.hbm [shape: f32[16,128], index: 0, kind: input, shape index: {}]   ;;  %s224_s1 = inlined_call_operand.hbm [shape: f32[16,128], index: 1, kind: input, shape index: {}]   ;;  %s225_s2 = inlined_call_operand.hbm [shape: f32[1,1,8,128], index: 2, kind: output, shape index: {}]  }
   0x1   :  { %8 = vsyncpa [#allocation7], 0 }
   0x2   :  { %9 = vsyncpa [#allocation5], 0  ;;  %s167_s9 = smov [#allocation3]   ;;  %s95_s13 = scalar_lea.hbm %s223_s0, 256 }
   0x3   :  { %s19_s10 = sshll.u32 %s167_s9, 4  ;;  %p96_p0 = scmp.ne.s32.totalorder %s223_s0, %s95_s13  ;;  %s20_s10 = int_to_ptr.vmem [resolvable:$true] %s19_s10 }
   0x4   :  { %p99_p1 = scmp.lt.u32.totalorder %s95_s13, %s223_s0 }
   0x6   :  { %p101_p2 = pnand %p99_p1, %p96_p0 }
   0x8   :  { %104 = shalt.err (!%p101_p2)
}
   0x9   :  { %s105_s18 = scalar_lea.vmem %s20_s10, 256  ;;  %p110_p4 = scmp.lt.s32.totalorder %s20_s10, %s20_s10 }
   0xa   :  { %p106_p3 = scmp.ne.s32.totalorder %s20_s10, %s105_s18  ;;  %p111_p5 = scmp.lt.s32.totalorder %s105_s18, %s105_s18 }
   0xc   :  { %p112_p6 = por %p111_p5, %p110_p4 }
   0xe   :  { %p113_p7 = pnand %p112_p6, %p106_p3 }
  0x10   :  { %116 = shalt.err (!%p113_p7)
}
  0x11   :  { %s168_s19 = smov 128   ;;  %s169_s20 = smov 8  }
  0x12   :  { %25 = dma.hbm_to_vmem [thread:$0]  %s223_s0, 256, %s20_s10, [#allocation4], %s168_s19, %s168_s19, %s169_s20  }
  0x13   :  { %s170_s23 = smov [#allocation6]   ;;  %s117_s27 = scalar_lea.hbm %s224_s1, 256 }
  0x14   :  { %s35_s24 = sshll.u32 %s170_s23, 4  ;;  %p118_p8 = scmp.ne.s32.totalorder %s224_s1, %s117_s27  ;;  %s36_s24 = int_to_ptr.vmem [resolvable:$true] %s35_s24 }
  0x15   :  { %p121_p9 = scmp.lt.u32.totalorder %s117_s27, %s224_s1 }
  0x17   :  { %p123_p10 = pnand %p121_p9, %p118_p8 }
  0x19   :  { %126 = shalt.err (!%p123_p10)
}
  0x1a   :  { %s127_s4 = scalar_lea.vmem %s36_s24, 256  ;;  %p132_p12 = scmp.lt.s32.totalorder %s36_s24, %s36_s24 }
  0x1b   :  { %p128_p11 = scmp.ne.s32.totalorder %s36_s24, %s127_s4  ;;  %p133_p13 = scmp.lt.s32.totalorder %s127_s4, %s127_s4 }
  0x1d   :  { %p134_p0 = por %p133_p13, %p132_p12 }
  0x1f   :  { %p135_p1 = pnand %p134_p0, %p128_p11 }
  0x21   :  { %138 = shalt.err (!%p135_p1)
}
  0x22   :  { %41 = dma.hbm_to_vmem [thread:$0]  %s224_s1, 256, %s36_s24, [#allocation7], %s168_s19, %s168_s19, %s169_s20  }
  0x23   :  { %161 = dma.done.wait [#allocation4], 256  }
  0x24   :  { %162 = vsyncadd [#allocation4], 4294967040 }
  0x25   :  { %163 = dma.done.wait [#allocation7], 256  }
  0x26   :  { %164 = vsyncadd [#allocation7], 4294967040  ;;  %v57_v0 = vld [vmem:[#allocation3] sm:$0xff]  ;;  %v58_v1 = vld [vmem:[#allocation3 + $0x8] sm:$0xff]  ;;  %s171_s6 = smov [#allocation8]  }
  0x27   :  { %v59_v2 = vld [vmem:[#allocation6] sm:$0xff]  ;;  %v60_v3 = vld [vmem:[#allocation6 + $0x8] sm:$0xff]  ;;  %s80_s7 = sshll.u32 %s171_s6, 4  ;;  %s81_s7 = int_to_ptr.vmem [resolvable:$true] %s80_s7 }
  0x28   :  { %v61_v4 = vsub.f32 %v59_v2, %v57_v0  ;;  %v62_v5 = vsub.f32 %v60_v3, %v58_v1  ;;  %s139_s8 = scalar_lea.vmem %s81_s7, 128  ;;  %p144_p3 = scmp.lt.s32.totalorder %s81_s7, %s81_s7 }
  0x29   :  { %p140_p2 = scmp.ne.s32.totalorder %s81_s7, %s139_s8  ;;  %p145_p4 = scmp.lt.s32.totalorder %s139_s8, %s139_s8 }
  0x2a   :  { %v63_v6 = vmul.f32 %v61_v4, %v61_v4  ;;  %v64_v7 = vmul.f32 %v62_v5, %v62_v5 }
  0x2b   :  { %p146_p5 = por %p145_p4, %p144_p3 }
  0x2c   :  { %v65_v8 = vadd.f32 %v64_v7, %v63_v6 }
  0x2d   :  { %p147_p6 = pnand %p146_p5, %p140_p2 }
  0x2e   :  { %73 = vst [vmem:[#allocation8] sm:$0xff] %v65_v8 }
  0x2f   :  { %150 = shalt.err (!%p147_p6)
}
  0x30   :  { %s151_s10 = scalar_lea.hbm %s225_s2, 128 }
  0x31   :  { %p152_p7 = scmp.ne.s32.totalorder %s225_s2, %s151_s10  ;;  %p155_p8 = scmp.lt.u32.totalorder %s151_s10, %s225_s2 }
  0x33   :  { %p157_p9 = pnand %p155_p8, %p152_p7 }
  0x35   :  { %160 = shalt.err (!%p157_p9)
}
  0x36   :  { %83 = dma.vmem_to_hbm [thread:$0]  %s81_s7, 128, %s225_s2, [#allocation5]  }
  0x37   :  { %165 = dma.done.wait [#allocation5], 128  }
  0x38   :  { %166 = vsyncadd [#allocation5], 4294967168 }
  0x39   :  { %87 = vsyncpa [#allocation4], 1 }
  0x3a   :  { %88 = vsyncpa [#allocation7], 1 }
  0x3b   :  { %89 = vsyncpa [#allocation5], 1 }

</bundles_post_ra>
